<compile_context>
chip_gen: v5e
topology: v5e:2x2
jax: 0.10.0
libtpu: 0.0.40
codegen_flags: <defaults>
</compile_context>

<pallas_src>
import jax
import jax.numpy as jnp
from jax import lax
from jax.experimental import pallas as pl
from jax.experimental.pallas import tpu as pltpu  # noqa: F401  (TPU backend)

# ----- module-consistent (scaled-down) shapes --------------------------------
B = 2            # batch
C_IN = 4         # input channels
HW = 16          # spatial size
FEAT = 8         # pretrain.fc.in_features (conv feature channels)
SHAPES = [32, 32, 16, 8]   # scaled-down version of [1024, 1024, 512, 128]
TASKS = 2
EPS = 1e-5       # BatchNorm eps

KRAW = 9 * C_IN          # 36  im2col contraction depth
KPAD = 40                # padded to a multiple of 8
WPAD = 32                # uniform padded feature width (= max(SHAPES))
ROWS = B * HW * HW       # 512 im2col rows
NCHUNK = 4               # conv activation chunks
CHUNK = ROWS // NCHUNK   # 128 rows per chunk
VROWS = 16               # vec slab rows (sublane-aligned)
OUT_R, OUT_C = 8, 128    # lane-dense output tile


def _full_spec(shape):
    """Whole-array block resident in VMEM (grid=(1,))."""
    nd = len(shape)
    return pl.BlockSpec(shape, lambda i, nd=nd: (0,) * nd)


# --------------------------- fused kernel ------------------------------------
def _bn_relu(x, gamma, beta):
    mean = jnp.mean(x, axis=0, keepdims=True)
    var = jnp.mean((x - mean) ** 2, axis=0, keepdims=True)   # biased var (torch train mode)
    return jnp.maximum((x - mean) * jax.lax.rsqrt(var + EPS) * gamma + beta, 0.0)


def fused_kernel(patch_ref, pool_ref, wconv_ref, wmlp_ref, vec_ref, out_ref):
    wconv = wconv_ref[...]            # (KPAD, WPAD)
    bconv = vec_ref[0:1, :]           # (1, WPAD) broadcast-ready row

    # pretrain backbone: conv3x3 via chunked im2col matmul, bias+ReLU, then the
    # global average pool as a second (tiny) MXU matmul per chunk.
    def chunk_body(i, feat):
        r0 = pl.multiple_of(i * CHUNK, CHUNK)
        act = jnp.dot(patch_ref[pl.ds(r0, CHUNK), :], wconv,
                      preferred_element_type=jnp.float32)         # (CHUNK, WPAD)
        act = jnp.maximum(act + bconv, 0.0)
        return feat + jnp.dot(pool_ref[i], act,
                              preferred_element_type=jnp.float32)  # (B, WPAD)

    feat = lax.fori_loop(0, NCHUNK, chunk_body,
                         jnp.zeros((B, WPAD), jnp.float32), unroll=True)

    # pretrain.fc -> BN -> ReLU
    x = jnp.dot(feat, wmlp_ref[0], preferred_element_type=jnp.float32) + vec_ref[1:2, :]
    x = _bn_relu(x, vec_ref[2:3, :], vec_ref[3:4, :])
    # shared: fc1 -> bn1 -> relu1
    x = jnp.dot(x, wmlp_ref[1], preferred_element_type=jnp.float32) + vec_ref[4:5, :]
    x = _bn_relu(x, vec_ref[5:6, :], vec_ref[6:7, :])
    # shared: fc2 -> bn2 -> relu2
    x = jnp.dot(x, wmlp_ref[2], preferred_element_type=jnp.float32) + vec_ref[7:8, :]
    x = _bn_relu(x, vec_ref[8:9, :], vec_ref[9:10, :])
    # shared: fc3, then the F.relu after `shared`
    x = jnp.dot(x, wmlp_ref[3], preferred_element_type=jnp.float32) + vec_ref[10:11, :]
    x = jnp.maximum(x, 0.0)
    # task head: all tasks share identical weights (manual_seed(7)) -> compute once
    head = jnp.dot(x, wmlp_ref[4], preferred_element_type=jnp.float32) + vec_ref[11:12, :]

    # single unmasked full-tile store; real values live at [:B, :WPAD]
    out_ref[...] = jnp.pad(head, ((0, OUT_R - B), (0, OUT_C - WPAD)))


# ----------------------------- wrapper ----------------------------------------
def _im2col(x_nchw):
    """NCHW input -> (ROWS, KPAD) f32 patch matrix (fuses with XLA transpose/pad)."""
    x = jnp.transpose(x_nchw, (0, 2, 3, 1)).astype(jnp.float32)        # NHWC
    xpad = jnp.pad(x, ((0, 0), (1, 1), (1, 1), (0, 0)))                # conv pad=1
    taps = [xpad[:, kh:kh + HW, kw:kw + HW, :]
            for kh in range(3) for kw in range(3)]
    patches = jnp.stack(taps, axis=3).reshape(ROWS, KRAW)              # (512, 36), (kh,kw,c)
    return jnp.pad(patches, ((0, 0), (0, KPAD - KRAW)))                # (512, 40)


def pack_params(p):
    """Pack 17 tiny parameter arrays into 3 zero-padded slabs.  Done ONCE at init.

    Padded rows/cols/lanes are all zero -> padded lanes stay exactly 0 through the
    whole kernel (matmuls and _bn_relu).  See invariant note at file top.
    """
    def pad2(a, rows, cols):
        return jnp.pad(a, ((0, rows - a.shape[0]), (0, cols - a.shape[1])))

    wconv = pad2(p['wconv'].reshape(KRAW, FEAT), KPAD, WPAD)           # (40, 32)
    wmlp = jnp.stack([pad2(p['wfc'], WPAD, WPAD),
                      pad2(p['w1'], WPAD, WPAD),
                      pad2(p['w2'], WPAD, WPAD),
                      pad2(p['w3'], WPAD, WPAD),
                      pad2(p['wh'][0], WPAD, WPAD)])                   # (5, 32, 32)

    def padv(a):
        v = a.reshape(-1)
        return jnp.pad(v, (0, WPAD - v.shape[0]))

    rows = [padv(p['bconv']), padv(p['bfc']),
            padv(p['g0']), padv(p['be0']),
            padv(p['b1']), padv(p['g1']), padv(p['be1']),
            padv(p['b2']), padv(p['g2']), padv(p['be2']),
            padv(p['b3']), padv(p['bh'][0])]
    rows += [jnp.zeros((WPAD,), jnp.float32)] * (VROWS - len(rows))
    vec = jnp.stack(rows)                                              # (16, 32)
    return wconv, wmlp, vec


def make_pool():
    """Block-diagonal average-pool slab: pool[c] maps chunk c's 128 rows to its batch."""
    chunks_per_b = NCHUNK // B
    pool = jnp.zeros((NCHUNK, B, CHUNK), jnp.float32)
    for c in range(NCHUNK):
        pool = pool.at[c, c // chunks_per_b, :].set(1.0 / (HW * HW))
    return pool                                                        # (4, 2, 128)


@jax.jit
def mtl_forward(x_nchw, wconv, wmlp, vec, pool):
    patches = _im2col(x_nchw)
    args = (patches, pool, wconv, wmlp, vec)

    flops = (2 * ROWS * KPAD * WPAD               # conv im2col matmul
             + 2 * ROWS * B * WPAD                # pooling matmuls
             + 5 * 2 * B * WPAD * WPAD)           # MLP + head matmuls
    transcendentals = 3 * WPAD                    # three BN rsqrt row-vectors
    bytes_accessed = sum(int(a.size) * 4 for a in args) + OUT_R * OUT_C * 4

    out = pl.pallas_call(
        fused_kernel,
        grid=(1,),
        in_specs=[_full_spec(a.shape) for a in args],
        out_specs=_full_spec((OUT_R, OUT_C)),
        out_shape=jax.ShapeDtypeStruct((OUT_R, OUT_C), jnp.float32),
        cost_estimate=pl.CostEstimate(flops=flops,
                                      transcendentals=transcendentals,
                                      bytes_accessed=bytes_accessed),
    )(*args)

    head = out[:B, :2]                 # (B, 2)
    # identical task heads (torch.manual_seed(7) before each) -> identical outputs
    return [head for _ in range(TASKS)]


# ----------------------------- params ----------------------------------------
def init_params():
    key = jax.random.PRNGKey(42)
    ks = iter(jax.random.split(key, 16))

    def rn(shape, scale=0.1):
        return scale * jax.random.normal(next(ks), shape, jnp.float32)

    p = {}
    p['wconv'] = rn((3, 3, C_IN, FEAT))
    p['bconv'] = rn((1, FEAT))
    p['wfc'] = rn((FEAT, SHAPES[0]));     p['bfc'] = rn((1, SHAPES[0]))
    p['w1'] = rn((SHAPES[0], SHAPES[1])); p['b1'] = rn((1, SHAPES[1]))
    p['w2'] = rn((SHAPES[1], SHAPES[2])); p['b2'] = rn((1, SHAPES[2]))
    p['w3'] = rn((SHAPES[2], SHAPES[3])); p['b3'] = rn((1, SHAPES[3]))
    # BatchNorm1d default affine init: gamma = 1, beta = 0
    for i, s in enumerate(SHAPES[:3]):
        p[f'g{i}'] = jnp.ones((1, s), jnp.float32)
        p[f'be{i}'] = jnp.zeros((1, s), jnp.float32)
    # task heads: manual_seed(7) before each -> identical weights across tasks
    wh = rn((SHAPES[3], 2)); bh = rn((1, 2))
    p['wh'] = jnp.tile(wh[None], (TASKS, 1, 1))
    p['bh'] = jnp.tile(bh[None], (TASKS, 1, 1))
    return p


# ----------------------------- pure-JAX reference ----------------------------
def reference(x_nchw, p):
    x = jnp.transpose(x_nchw, (0, 2, 3, 1)).astype(jnp.float32)
    xpad = jnp.pad(x, ((0, 0), (1, 1), (1, 1), (0, 0)))
    acc = jnp.zeros((B, HW, HW, FEAT), jnp.float32)
    for kh in range(3):
        for kw in range(3):
            acc = acc + jnp.einsum('bhwc,cf->bhwf',
                                   xpad[:, kh:kh + HW, kw:kw + HW, :],
                                   p['wconv'][kh, kw])
    acc = jax.nn.relu(acc + p['bconv'][0])
    feat = jnp.mean(acc, axis=(1, 2))

    def bn_relu(x, g, b):
        m = x.mean(0, keepdims=True)
        v = ((x - m) ** 2).mean(0, keepdims=True)
        return jax.nn.relu((x - m) / jnp.sqrt(v + EPS) * g + b)

    h = bn_relu(feat @ p['wfc'] + p['bfc'], p['g0'], p['be0'])
    h = bn_relu(h @ p['w1'] + p['b1'], p['g1'], p['be1'])
    h = bn_relu(h @ p['w2'] + p['b2'], p['g2'], p['be2'])
    h = jax.nn.relu(h @ p['w3'] + p['b3'])
    return [h @ p['wh'][t] + p['bh'][t] for t in range(TASKS)]


# ----------------------------- main -------------------------------------------
if __name__ == "__main__":
    x = jax.random.normal(jax.random.PRNGKey(0), (B, C_IN, HW, HW), jnp.float32)
    params = init_params()

    # hoisted out of the hot path: pack the 17 tiny params into 3 slabs + pool, once
    wconv, wmlp, vec = pack_params(params)
    pool = make_pool()

    outs = jax.block_until_ready(mtl_forward(x, wconv, wmlp, vec, pool))

    refs = reference(x, params)
    for o, r in zip(outs, refs):
        assert o.shape == (B, 2), o.shape
        assert jnp.allclose(o, r, atol=1e-4, rtol=1e-4), (o, r)

    print("KERNEL_OK")
</pallas_src>

<mosaic_0001>
module attributes {stable_mosaic.version = 11 : i64} {
  func.func @fused_kernel(%arg0: i32, %arg1: memref<512x40xf32, #tpu.memory_space<vmem>>, %arg2: memref<4x2x128xf32, #tpu.memory_space<vmem>>, %arg3: memref<40x32xf32, #tpu.memory_space<vmem>>, %arg4: memref<5x32x32xf32, #tpu.memory_space<vmem>>, %arg5: memref<16x32xf32, #tpu.memory_space<vmem>>, %arg6: memref<8x128xf32, #tpu.memory_space<vmem>>) attributes {dimension_semantics = [#tpu.dimension_semantics<arbitrary>], iteration_bounds = array<i64: 1>, scalar_prefetch = 0 : i64, scratch_operands = 0 : i64, tpu.core_type = #tpu.core_type<tc>, window_params = [{pipeline_mode = #tpu.pipeline_mode<synchronous>, transform_indices = @transform_0, window_bounds = array<i64: 512, 40>}, {pipeline_mode = #tpu.pipeline_mode<synchronous>, transform_indices = @transform_1, window_bounds = array<i64: 4, 2, 128>}, {pipeline_mode = #tpu.pipeline_mode<synchronous>, transform_indices = @transform_2, window_bounds = array<i64: 40, 32>}, {pipeline_mode = #tpu.pipeline_mode<synchronous>, transform_indices = @transform_3, window_bounds = array<i64: 5, 32, 32>}, {pipeline_mode = #tpu.pipeline_mode<synchronous>, transform_indices = @transform_4, window_bounds = array<i64: 16, 32>}, {pipeline_mode = #tpu.pipeline_mode<synchronous>, transform_indices = @transform_5, window_bounds = array<i64: 8, 128>}]} {
    %c0 = arith.constant 0 : index
    %c0_0 = arith.constant 0 : index
    %0 = vector.load %arg3[%c0, %c0_0] : memref<40x32xf32, #tpu.memory_space<vmem>>, vector<40x32xf32>
    %c0_1 = arith.constant 0 : index
    %c0_2 = arith.constant 0 : index
    %1 = vector.load %arg5[%c0_1, %c0_2] : memref<16x32xf32, #tpu.memory_space<vmem>>, vector<1x32xf32>
    %cst = arith.constant 0.000000e+00 : f32
    %2 = vector.broadcast %cst : f32 to vector<2x32xf32>
    %c0_i32 = arith.constant 0 : i32
    %c128_i32 = arith.constant 128 : i32
    %3 = arith.muli %c0_i32, %c128_i32 : i32
    %4 = tpu.assume_multiple %3, 128 : i32
    %5 = arith.index_cast %4 : i32 to index
    %c0_3 = arith.constant 0 : index
    %6 = vector.load %arg1[%5, %c0_3] : memref<512x40xf32, #tpu.memory_space<vmem>>, vector<128x40xf32>
    %cst_4 = arith.constant dense<0.000000e+00> : vector<128x32xf32>
    %7 = tpu.matmul %6, %0, %cst_4 {dimension_numbers = #tpu.dot_dimension_numbers<[1], [0], [0], [1], [0, 0, 1, 1], [], []>} : vector<128x40xf32>, vector<40x32xf32>, vector<128x32xf32> -> vector<128x32xf32>
    %8 = vector.broadcast %1 : vector<1x32xf32> to vector<128x32xf32>
    %9 = arith.addf %7, %8 : vector<128x32xf32>
    %cst_5 = arith.constant 0.000000e+00 : f32
    %10 = vector.broadcast %cst_5 : f32 to vector<128x32xf32>
    %11 = arith.maximumf %9, %10 : vector<128x32xf32>
    %12 = arith.index_cast %c0_i32 : i32 to index
    %c0_6 = arith.constant 0 : index
    %c0_7 = arith.constant 0 : index
    %13 = vector.load %arg2[%12, %c0_6, %c0_7] : memref<4x2x128xf32, #tpu.memory_space<vmem>>, vector<1x2x128xf32>
    %14 = vector.shape_cast %13 : vector<1x2x128xf32> to vector<2x128xf32>
    %cst_8 = arith.constant dense<0.000000e+00> : vector<2x32xf32>
    %15 = tpu.matmul %14, %11, %cst_8 {dimension_numbers = #tpu.dot_dimension_numbers<[1], [0], [0], [1], [0, 0, 1, 1], [], []>} : vector<2x128xf32>, vector<128x32xf32>, vector<2x32xf32> -> vector<2x32xf32>
    %16 = arith.addf %2, %15 : vector<2x32xf32>
    %c1_i32 = arith.constant 1 : i32
    %c128_i32_9 = arith.constant 128 : i32
    %17 = arith.muli %c1_i32, %c128_i32_9 : i32
    %18 = tpu.assume_multiple %17, 128 : i32
    %19 = arith.index_cast %18 : i32 to index
    %c0_10 = arith.constant 0 : index
    %20 = vector.load %arg1[%19, %c0_10] : memref<512x40xf32, #tpu.memory_space<vmem>>, vector<128x40xf32>
    %cst_11 = arith.constant dense<0.000000e+00> : vector<128x32xf32>
    %21 = tpu.matmul %20, %0, %cst_11 {dimension_numbers = #tpu.dot_dimension_numbers<[1], [0], [0], [1], [0, 0, 1, 1], [], []>} : vector<128x40xf32>, vector<40x32xf32>, vector<128x32xf32> -> vector<128x32xf32>
    %22 = vector.broadcast %1 : vector<1x32xf32> to vector<128x32xf32>
    %23 = arith.addf %21, %22 : vector<128x32xf32>
    %cst_12 = arith.constant 0.000000e+00 : f32
    %24 = vector.broadcast %cst_12 : f32 to vector<128x32xf32>
    %25 = arith.maximumf %23, %24 : vector<128x32xf32>
    %26 = arith.index_cast %c1_i32 : i32 to index
    %c0_13 = arith.constant 0 : index
    %c0_14 = arith.constant 0 : index
    %27 = vector.load %arg2[%26, %c0_13, %c0_14] : memref<4x2x128xf32, #tpu.memory_space<vmem>>, vector<1x2x128xf32>
    %28 = vector.shape_cast %27 : vector<1x2x128xf32> to vector<2x128xf32>
    %cst_15 = arith.constant dense<0.000000e+00> : vector<2x32xf32>
    %29 = tpu.matmul %28, %25, %cst_15 {dimension_numbers = #tpu.dot_dimension_numbers<[1], [0], [0], [1], [0, 0, 1, 1], [], []>} : vector<2x128xf32>, vector<128x32xf32>, vector<2x32xf32> -> vector<2x32xf32>
    %30 = arith.addf %16, %29 : vector<2x32xf32>
    %c2_i32 = arith.constant 2 : i32
    %c128_i32_16 = arith.constant 128 : i32
    %31 = arith.muli %c2_i32, %c128_i32_16 : i32
    %32 = tpu.assume_multiple %31, 128 : i32
    %33 = arith.index_cast %32 : i32 to index
    %c0_17 = arith.constant 0 : index
    %34 = vector.load %arg1[%33, %c0_17] : memref<512x40xf32, #tpu.memory_space<vmem>>, vector<128x40xf32>
    %cst_18 = arith.constant dense<0.000000e+00> : vector<128x32xf32>
    %35 = tpu.matmul %34, %0, %cst_18 {dimension_numbers = #tpu.dot_dimension_numbers<[1], [0], [0], [1], [0, 0, 1, 1], [], []>} : vector<128x40xf32>, vector<40x32xf32>, vector<128x32xf32> -> vector<128x32xf32>
    %36 = vector.broadcast %1 : vector<1x32xf32> to vector<128x32xf32>
    %37 = arith.addf %35, %36 : vector<128x32xf32>
    %cst_19 = arith.constant 0.000000e+00 : f32
    %38 = vector.broadcast %cst_19 : f32 to vector<128x32xf32>
    %39 = arith.maximumf %37, %38 : vector<128x32xf32>
    %40 = arith.index_cast %c2_i32 : i32 to index
    %c0_20 = arith.constant 0 : index
    %c0_21 = arith.constant 0 : index
    %41 = vector.load %arg2[%40, %c0_20, %c0_21] : memref<4x2x128xf32, #tpu.memory_space<vmem>>, vector<1x2x128xf32>
    %42 = vector.shape_cast %41 : vector<1x2x128xf32> to vector<2x128xf32>
    %cst_22 = arith.constant dense<0.000000e+00> : vector<2x32xf32>
    %43 = tpu.matmul %42, %39, %cst_22 {dimension_numbers = #tpu.dot_dimension_numbers<[1], [0], [0], [1], [0, 0, 1, 1], [], []>} : vector<2x128xf32>, vector<128x32xf32>, vector<2x32xf32> -> vector<2x32xf32>
    %44 = arith.addf %30, %43 : vector<2x32xf32>
    %c3_i32 = arith.constant 3 : i32
    %c128_i32_23 = arith.constant 128 : i32
    %45 = arith.muli %c3_i32, %c128_i32_23 : i32
    %46 = tpu.assume_multiple %45, 128 : i32
    %47 = arith.index_cast %46 : i32 to index
    %c0_24 = arith.constant 0 : index
    %48 = vector.load %arg1[%47, %c0_24] : memref<512x40xf32, #tpu.memory_space<vmem>>, vector<128x40xf32>
    %cst_25 = arith.constant dense<0.000000e+00> : vector<128x32xf32>
    %49 = tpu.matmul %48, %0, %cst_25 {dimension_numbers = #tpu.dot_dimension_numbers<[1], [0], [0], [1], [0, 0, 1, 1], [], []>} : vector<128x40xf32>, vector<40x32xf32>, vector<128x32xf32> -> vector<128x32xf32>
    %50 = vector.broadcast %1 : vector<1x32xf32> to vector<128x32xf32>
    %51 = arith.addf %49, %50 : vector<128x32xf32>
    %cst_26 = arith.constant 0.000000e+00 : f32
    %52 = vector.broadcast %cst_26 : f32 to vector<128x32xf32>
    %53 = arith.maximumf %51, %52 : vector<128x32xf32>
    %54 = arith.index_cast %c3_i32 : i32 to index
    %c0_27 = arith.constant 0 : index
    %c0_28 = arith.constant 0 : index
    %55 = vector.load %arg2[%54, %c0_27, %c0_28] : memref<4x2x128xf32, #tpu.memory_space<vmem>>, vector<1x2x128xf32>
    %56 = vector.shape_cast %55 : vector<1x2x128xf32> to vector<2x128xf32>
    %cst_29 = arith.constant dense<0.000000e+00> : vector<2x32xf32>
    %57 = tpu.matmul %56, %53, %cst_29 {dimension_numbers = #tpu.dot_dimension_numbers<[1], [0], [0], [1], [0, 0, 1, 1], [], []>} : vector<2x128xf32>, vector<128x32xf32>, vector<2x32xf32> -> vector<2x32xf32>
    %58 = arith.addf %44, %57 : vector<2x32xf32>
    %c4_i32 = arith.constant 4 : i32
    %c0_30 = arith.constant 0 : index
    %c0_31 = arith.constant 0 : index
    %c0_32 = arith.constant 0 : index
    %59 = vector.load %arg4[%c0_30, %c0_31, %c0_32] : memref<5x32x32xf32, #tpu.memory_space<vmem>>, vector<1x32x32xf32>
    %60 = vector.shape_cast %59 : vector<1x32x32xf32> to vector<32x32xf32>
    %cst_33 = arith.constant dense<0.000000e+00> : vector<2x32xf32>
    %61 = tpu.matmul %58, %60, %cst_33 {dimension_numbers = #tpu.dot_dimension_numbers<[1], [0], [0], [1], [0, 0, 1, 1], [], []>} : vector<2x32xf32>, vector<32x32xf32>, vector<2x32xf32> -> vector<2x32xf32>
    %c1 = arith.constant 1 : index
    %c0_34 = arith.constant 0 : index
    %62 = vector.load %arg5[%c1, %c0_34] : memref<16x32xf32, #tpu.memory_space<vmem>>, vector<1x32xf32>
    %63 = vector.broadcast %62 : vector<1x32xf32> to vector<2x32xf32>
    %64 = arith.addf %61, %63 : vector<2x32xf32>
    %c2 = arith.constant 2 : index
    %c0_35 = arith.constant 0 : index
    %65 = vector.load %arg5[%c2, %c0_35] : memref<16x32xf32, #tpu.memory_space<vmem>>, vector<1x32xf32>
    %c3 = arith.constant 3 : index
    %c0_36 = arith.constant 0 : index
    %66 = vector.load %arg5[%c3, %c0_36] : memref<16x32xf32, #tpu.memory_space<vmem>>, vector<1x32xf32>
    %cst_37 = arith.constant dense<0.000000e+00> : vector<32xf32>
    %67 = vector.multi_reduction <add>, %64, %cst_37 [0] : vector<2x32xf32> to vector<32xf32>
    %68 = vector.shape_cast %67 : vector<32xf32> to vector<1x32xf32>
    %cst_38 = arith.constant 2.000000e+00 : f32
    %69 = vector.broadcast %cst_38 : f32 to vector<1x32xf32>
    %70 = arith.divf %68, %69 : vector<1x32xf32>
    %71 = vector.broadcast %70 : vector<1x32xf32> to vector<2x32xf32>
    %72 = arith.subf %64, %71 : vector<2x32xf32>
    %73 = arith.mulf %72, %72 : vector<2x32xf32>
    %cst_39 = arith.constant dense<0.000000e+00> : vector<32xf32>
    %74 = vector.multi_reduction <add>, %73, %cst_39 [0] : vector<2x32xf32> to vector<32xf32>
    %75 = vector.shape_cast %74 : vector<32xf32> to vector<1x32xf32>
    %cst_40 = arith.constant 2.000000e+00 : f32
    %76 = vector.broadcast %cst_40 : f32 to vector<1x32xf32>
    %77 = arith.divf %75, %76 : vector<1x32xf32>
    %78 = vector.broadcast %70 : vector<1x32xf32> to vector<2x32xf32>
    %79 = arith.subf %64, %78 : vector<2x32xf32>
    %cst_41 = arith.constant 9.99999974E-6 : f32
    %80 = vector.broadcast %cst_41 : f32 to vector<1x32xf32>
    %81 = arith.addf %77, %80 : vector<1x32xf32>
    %82 = math.rsqrt %81 : vector<1x32xf32>
    %83 = vector.broadcast %82 : vector<1x32xf32> to vector<2x32xf32>
    %84 = arith.mulf %79, %83 : vector<2x32xf32>
    %85 = vector.broadcast %65 : vector<1x32xf32> to vector<2x32xf32>
    %86 = arith.mulf %84, %85 : vector<2x32xf32>
    %87 = vector.broadcast %66 : vector<1x32xf32> to vector<2x32xf32>
    %88 = arith.addf %86, %87 : vector<2x32xf32>
    %cst_42 = arith.constant 0.000000e+00 : f32
    %89 = vector.broadcast %cst_42 : f32 to vector<2x32xf32>
    %90 = arith.maximumf %88, %89 : vector<2x32xf32>
    %c1_43 = arith.constant 1 : index
    %c0_44 = arith.constant 0 : index
    %c0_45 = arith.constant 0 : index
    %91 = vector.load %arg4[%c1_43, %c0_44, %c0_45] : memref<5x32x32xf32, #tpu.memory_space<vmem>>, vector<1x32x32xf32>
    %92 = vector.shape_cast %91 : vector<1x32x32xf32> to vector<32x32xf32>
    %cst_46 = arith.constant dense<0.000000e+00> : vector<2x32xf32>
    %93 = tpu.matmul %90, %92, %cst_46 {dimension_numbers = #tpu.dot_dimension_numbers<[1], [0], [0], [1], [0, 0, 1, 1], [], []>} : vector<2x32xf32>, vector<32x32xf32>, vector<2x32xf32> -> vector<2x32xf32>
    %c4 = arith.constant 4 : index
    %c0_47 = arith.constant 0 : index
    %94 = vector.load %arg5[%c4, %c0_47] : memref<16x32xf32, #tpu.memory_space<vmem>>, vector<1x32xf32>
    %95 = vector.broadcast %94 : vector<1x32xf32> to vector<2x32xf32>
    %96 = arith.addf %93, %95 : vector<2x32xf32>
    %c5 = arith.constant 5 : index
    %c0_48 = arith.constant 0 : index
    %97 = vector.load %arg5[%c5, %c0_48] : memref<16x32xf32, #tpu.memory_space<vmem>>, vector<1x32xf32>
    %c6 = arith.constant 6 : index
    %c0_49 = arith.constant 0 : index
    %98 = vector.load %arg5[%c6, %c0_49] : memref<16x32xf32, #tpu.memory_space<vmem>>, vector<1x32xf32>
    %cst_50 = arith.constant dense<0.000000e+00> : vector<32xf32>
    %99 = vector.multi_reduction <add>, %96, %cst_50 [0] : vector<2x32xf32> to vector<32xf32>
    %100 = vector.shape_cast %99 : vector<32xf32> to vector<1x32xf32>
    %cst_51 = arith.constant 2.000000e+00 : f32
    %101 = vector.broadcast %cst_51 : f32 to vector<1x32xf32>
    %102 = arith.divf %100, %101 : vector<1x32xf32>
    %103 = vector.broadcast %102 : vector<1x32xf32> to vector<2x32xf32>
    %104 = arith.subf %96, %103 : vector<2x32xf32>
    %105 = arith.mulf %104, %104 : vector<2x32xf32>
    %cst_52 = arith.constant dense<0.000000e+00> : vector<32xf32>
    %106 = vector.multi_reduction <add>, %105, %cst_52 [0] : vector<2x32xf32> to vector<32xf32>
    %107 = vector.shape_cast %106 : vector<32xf32> to vector<1x32xf32>
    %cst_53 = arith.constant 2.000000e+00 : f32
    %108 = vector.broadcast %cst_53 : f32 to vector<1x32xf32>
    %109 = arith.divf %107, %108 : vector<1x32xf32>
    %110 = vector.broadcast %102 : vector<1x32xf32> to vector<2x32xf32>
    %111 = arith.subf %96, %110 : vector<2x32xf32>
    %cst_54 = arith.constant 9.99999974E-6 : f32
    %112 = vector.broadcast %cst_54 : f32 to vector<1x32xf32>
    %113 = arith.addf %109, %112 : vector<1x32xf32>
    %114 = math.rsqrt %113 : vector<1x32xf32>
    %115 = vector.broadcast %114 : vector<1x32xf32> to vector<2x32xf32>
    %116 = arith.mulf %111, %115 : vector<2x32xf32>
    %117 = vector.broadcast %97 : vector<1x32xf32> to vector<2x32xf32>
    %118 = arith.mulf %116, %117 : vector<2x32xf32>
    %119 = vector.broadcast %98 : vector<1x32xf32> to vector<2x32xf32>
    %120 = arith.addf %118, %119 : vector<2x32xf32>
    %cst_55 = arith.constant 0.000000e+00 : f32
    %121 = vector.broadcast %cst_55 : f32 to vector<2x32xf32>
    %122 = arith.maximumf %120, %121 : vector<2x32xf32>
    %c2_56 = arith.constant 2 : index
    %c0_57 = arith.constant 0 : index
    %c0_58 = arith.constant 0 : index
    %123 = vector.load %arg4[%c2_56, %c0_57, %c0_58] : memref<5x32x32xf32, #tpu.memory_space<vmem>>, vector<1x32x32xf32>
    %124 = vector.shape_cast %123 : vector<1x32x32xf32> to vector<32x32xf32>
    %cst_59 = arith.constant dense<0.000000e+00> : vector<2x32xf32>
    %125 = tpu.matmul %122, %124, %cst_59 {dimension_numbers = #tpu.dot_dimension_numbers<[1], [0], [0], [1], [0, 0, 1, 1], [], []>} : vector<2x32xf32>, vector<32x32xf32>, vector<2x32xf32> -> vector<2x32xf32>
    %c7 = arith.constant 7 : index
    %c0_60 = arith.constant 0 : index
    %126 = vector.load %arg5[%c7, %c0_60] : memref<16x32xf32, #tpu.memory_space<vmem>>, vector<1x32xf32>
    %127 = vector.broadcast %126 : vector<1x32xf32> to vector<2x32xf32>
    %128 = arith.addf %125, %127 : vector<2x32xf32>
    %c8 = arith.constant 8 : index
    %c0_61 = arith.constant 0 : index
    %129 = vector.load %arg5[%c8, %c0_61] : memref<16x32xf32, #tpu.memory_space<vmem>>, vector<1x32xf32>
    %c9 = arith.constant 9 : index
    %c0_62 = arith.constant 0 : index
    %130 = vector.load %arg5[%c9, %c0_62] : memref<16x32xf32, #tpu.memory_space<vmem>>, vector<1x32xf32>
    %cst_63 = arith.constant dense<0.000000e+00> : vector<32xf32>
    %131 = vector.multi_reduction <add>, %128, %cst_63 [0] : vector<2x32xf32> to vector<32xf32>
    %132 = vector.shape_cast %131 : vector<32xf32> to vector<1x32xf32>
    %cst_64 = arith.constant 2.000000e+00 : f32
    %133 = vector.broadcast %cst_64 : f32 to vector<1x32xf32>
    %134 = arith.divf %132, %133 : vector<1x32xf32>
    %135 = vector.broadcast %134 : vector<1x32xf32> to vector<2x32xf32>
    %136 = arith.subf %128, %135 : vector<2x32xf32>
    %137 = arith.mulf %136, %136 : vector<2x32xf32>
    %cst_65 = arith.constant dense<0.000000e+00> : vector<32xf32>
    %138 = vector.multi_reduction <add>, %137, %cst_65 [0] : vector<2x32xf32> to vector<32xf32>
    %139 = vector.shape_cast %138 : vector<32xf32> to vector<1x32xf32>
    %cst_66 = arith.constant 2.000000e+00 : f32
    %140 = vector.broadcast %cst_66 : f32 to vector<1x32xf32>
    %141 = arith.divf %139, %140 : vector<1x32xf32>
    %142 = vector.broadcast %134 : vector<1x32xf32> to vector<2x32xf32>
    %143 = arith.subf %128, %142 : vector<2x32xf32>
    %cst_67 = arith.constant 9.99999974E-6 : f32
    %144 = vector.broadcast %cst_67 : f32 to vector<1x32xf32>
    %145 = arith.addf %141, %144 : vector<1x32xf32>
    %146 = math.rsqrt %145 : vector<1x32xf32>
    %147 = vector.broadcast %146 : vector<1x32xf32> to vector<2x32xf32>
    %148 = arith.mulf %143, %147 : vector<2x32xf32>
    %149 = vector.broadcast %129 : vector<1x32xf32> to vector<2x32xf32>
    %150 = arith.mulf %148, %149 : vector<2x32xf32>
    %151 = vector.broadcast %130 : vector<1x32xf32> to vector<2x32xf32>
    %152 = arith.addf %150, %151 : vector<2x32xf32>
    %cst_68 = arith.constant 0.000000e+00 : f32
    %153 = vector.broadcast %cst_68 : f32 to vector<2x32xf32>
    %154 = arith.maximumf %152, %153 : vector<2x32xf32>
    %c3_69 = arith.constant 3 : index
    %c0_70 = arith.constant 0 : index
    %c0_71 = arith.constant 0 : index
    %155 = vector.load %arg4[%c3_69, %c0_70, %c0_71] : memref<5x32x32xf32, #tpu.memory_space<vmem>>, vector<1x32x32xf32>
    %156 = vector.shape_cast %155 : vector<1x32x32xf32> to vector<32x32xf32>
    %cst_72 = arith.constant dense<0.000000e+00> : vector<2x32xf32>
    %157 = tpu.matmul %154, %156, %cst_72 {dimension_numbers = #tpu.dot_dimension_numbers<[1], [0], [0], [1], [0, 0, 1, 1], [], []>} : vector<2x32xf32>, vector<32x32xf32>, vector<2x32xf32> -> vector<2x32xf32>
    %c10 = arith.constant 10 : index
    %c0_73 = arith.constant 0 : index
    %158 = vector.load %arg5[%c10, %c0_73] : memref<16x32xf32, #tpu.memory_space<vmem>>, vector<1x32xf32>
    %159 = vector.broadcast %158 : vector<1x32xf32> to vector<2x32xf32>
    %160 = arith.addf %157, %159 : vector<2x32xf32>
    %cst_74 = arith.constant 0.000000e+00 : f32
    %161 = vector.broadcast %cst_74 : f32 to vector<2x32xf32>
    %162 = arith.maximumf %160, %161 : vector<2x32xf32>
    %c4_75 = arith.constant 4 : index
    %c0_76 = arith.constant 0 : index
    %c0_77 = arith.constant 0 : index
    %163 = vector.load %arg4[%c4_75, %c0_76, %c0_77] : memref<5x32x32xf32, #tpu.memory_space<vmem>>, vector<1x32x32xf32>
    %164 = vector.shape_cast %163 : vector<1x32x32xf32> to vector<32x32xf32>
    %cst_78 = arith.constant dense<0.000000e+00> : vector<2x32xf32>
    %165 = tpu.matmul %162, %164, %cst_78 {dimension_numbers = #tpu.dot_dimension_numbers<[1], [0], [0], [1], [0, 0, 1, 1], [], []>} : vector<2x32xf32>, vector<32x32xf32>, vector<2x32xf32> -> vector<2x32xf32>
    %c11 = arith.constant 11 : index
    %c0_79 = arith.constant 0 : index
    %166 = vector.load %arg5[%c11, %c0_79] : memref<16x32xf32, #tpu.memory_space<vmem>>, vector<1x32xf32>
    %167 = vector.broadcast %166 : vector<1x32xf32> to vector<2x32xf32>
    %168 = arith.addf %165, %167 : vector<2x32xf32>
    %c0_i32_80 = arith.constant 0 : i32
    %169 = arith.sitofp %c0_i32_80 : i32 to f32
    %170 = vector.broadcast %169 : f32 to vector<6x32xf32>
    %171 = tpu.concatenate %168, %170 in 0 : vector<2x32xf32>, vector<6x32xf32> -> vector<8x32xf32>
    %172 = vector.broadcast %169 : f32 to vector<8x96xf32>
    %173 = tpu.concatenate %171, %172 in 1 : vector<8x32xf32>, vector<8x96xf32> -> vector<8x128xf32>
    %c0_81 = arith.constant 0 : index
    %c0_82 = arith.constant 0 : index
    %174 = vector.load %arg6[%c0_81, %c0_82] : memref<8x128xf32, #tpu.memory_space<vmem>>, vector<8x128xf32>
    tpu.vector_store %arg6[%c0_81, %c0_82], %173 {strides = array<i32>} : memref<8x128xf32, #tpu.memory_space<vmem>>, vector<8x128xf32>,
    return
  }
  func.func @transform_0(%arg0: i32) -> (i32, i32) {
    %c0_i32 = arith.constant 0 : i32
    %c0_i32_0 = arith.constant 0 : i32
    %c0_i32_1 = arith.constant 0 : i32
    return %c0_i32, %c0_i32_0 : i32, i32
  }
  func.func @transform_1(%arg0: i32) -> (i32, i32, i32) {
    %c0_i32 = arith.constant 0 : i32
    %c0_i32_0 = arith.constant 0 : i32
    %c0_i32_1 = arith.constant 0 : i32
    %c0_i32_2 = arith.constant 0 : i32
    return %c0_i32, %c0_i32_0, %c0_i32_1 : i32, i32, i32
  }
  func.func @transform_2(%arg0: i32) -> (i32, i32) {
    %c0_i32 = arith.constant 0 : i32
    %c0_i32_0 = arith.constant 0 : i32
    %c0_i32_1 = arith.constant 0 : i32
    return %c0_i32, %c0_i32_0 : i32, i32
  }
  func.func @transform_3(%arg0: i32) -> (i32, i32, i32) {
    %c0_i32 = arith.constant 0 : i32
    %c0_i32_0 = arith.constant 0 : i32
    %c0_i32_1 = arith.constant 0 : i32
    %c0_i32_2 = arith.constant 0 : i32
    return %c0_i32, %c0_i32_0, %c0_i32_1 : i32, i32, i32
  }
  func.func @transform_4(%arg0: i32) -> (i32, i32) {
    %c0_i32 = arith.constant 0 : i32
    %c0_i32_0 = arith.constant 0 : i32
    %c0_i32_1 = arith.constant 0 : i32
    return %c0_i32, %c0_i32_0 : i32, i32
  }
  func.func @transform_5(%arg0: i32) -> (i32, i32) {
    %c0_i32 = arith.constant 0 : i32
    %c0_i32_0 = arith.constant 0 : i32
    %c0_i32_1 = arith.constant 0 : i32
    return %c0_i32, %c0_i32_0 : i32, i32
  }
}

</mosaic_0001>

<bundles_post_ra>
// kernel: mtl_forward.1
= control target key start
LH: loop header
LB: loop body
LE: loop exit
PB: predicated region body
PF: predicated region fallthrough
CT: control target
= control target key end

     0   :  { %vm43_vm0 = vcmask 326656   ;;  %vm706_vm1 = vcmask 261120   ;;  %vm732_vm2 = vcmask 254976   ;;  %vm970_vm13 = vcmask 1041408   ;;  %s1709_s2 = inlined_call_operand.vmem [shape: f32[40,32], index: 2, kind: input, shape index: {}]   ;;  %s1710_s0 = inlined_call_operand.vmem [shape: f32[512,40], index: 0, kind: input, shape index: {}]   ;;  %s1711_s4 = inlined_call_operand.vmem [shape: f32[16,32], index: 4, kind: input, shape index: {}]   ;;  %s1712_s1 = inlined_call_operand.vmem [shape: f32[4,2,128], index: 1, kind: input, shape index: {}]   ;;  %s1713_s3 = inlined_call_operand.vmem [shape: f32[5,32,32], index: 3, kind: input, shape index: {}]   ;;  %s1714_s5 = inlined_call_operand.vmem [shape: f32[8,128], index: 5, kind: output, shape index: {}]  }
   0x1   :  { %v1169_v0 = vld [vmem:[%s1709_s2 + $0x20] sm:$0xff]  ;;  %v1174_v1 = vld [vmem:[%s1709_s2 + $0x18] sm:$0xff]  ;;  %v1181_v2 = vld [vmem:[%s1709_s2 + $0x10] sm:$0xff] }
   0x2   :  { %250 = vmatpush.msra.mxu1 %v1169_v0  ;;  %103 = vmatpush.msra.mxu0 %v1169_v0  ;;  %v1188_v3 = vld [vmem:[%s1709_s2 + $0x8] sm:$0xff]  ;;  %v1193_v4 = vld [vmem:[%s1709_s2] sm:$0xff]  ;;  %v996_v9 = vld [vmem:[%s1710_s0 + $0x90] sm:$0xff] }
   0x3   :  { %v994_v5 = vld [vmem:[%s1710_s0 + $0x80] sm:$0xff]  ;;  %v995_v7 = vld [vmem:[%s1710_s0 + $0x88] sm:$0xff]  ;;  %v28_v10 = vld [vmem:[%s1710_s0 + $0x10] sm:$0xff] }
   0x4   :  { %251 = vmatpush.msra.mxu1 %v1174_v1  ;;  %104 = vmatpush.msra.mxu0 %v1174_v1  ;;  %v26_v6 = vld [vmem:[%s1710_s0] sm:$0xff]  ;;  %v27_v8 = vld [vmem:[%s1710_s0 + $0x8] sm:$0xff]  ;;  %v997_v11 = vld [vmem:[%s1710_s0 + $0x98] sm:$0xff] }
   0x5   :  { %v29_v12 = vld [vmem:[%s1710_s0 + $0x18] sm:$0xff]  ;;  %v998_v13 = vld [vmem:[%s1710_s0 + $0xa0] sm:$0xff]  ;;  %v999_v15 = vld [vmem:[%s1710_s0 + $0xa8] sm:$0xff] }
   0x6   :  { %252 = vmatpush.msra.mxu1 %v1181_v2  ;;  %105 = vmatpush.msra.mxu0 %v1181_v2  ;;  %v30_v14 = vld [vmem:[%s1710_s0 + $0x20] sm:$0xff]  ;;  %v31_v16 = vld [vmem:[%s1710_s0 + $0x28] sm:$0xff]  ;;  %v1000_v17 = vld [vmem:[%s1710_s0 + $0xb0] sm:$0xff] }
   0x7   :  { %v32_v18 = vld [vmem:[%s1710_s0 + $0x30] sm:$0xff]  ;;  %v1001_v19 = vld [vmem:[%s1710_s0 + $0xb8] sm:$0xff]  ;;  %v1002_v21 = vld [vmem:[%s1710_s0 + $0xc0] sm:$0xff] }
   0x8   :  { %253 = vmatpush.msra.mxu1 %v1188_v3  ;;  %106 = vmatpush.msra.mxu0 %v1188_v3  ;;  %v33_v20 = vld [vmem:[%s1710_s0 + $0x38] sm:$0xff]  ;;  %v34_v22 = vld [vmem:[%s1710_s0 + $0x40] sm:$0xff]  ;;  %v1003_v23 = vld [vmem:[%s1710_s0 + $0xc8] sm:$0xff] }
   0x9   :  { %v35_v24 = vld [vmem:[%s1710_s0 + $0x48] sm:$0xff]  ;;  %v1004_v25 = vld [vmem:[%s1710_s0 + $0xd0] sm:$0xff]  ;;  %v1005_v27 = vld [vmem:[%s1710_s0 + $0xd8] sm:$0xff] }
   0xa   :  { %254 = vmatpush.msra.mxu1 %v1193_v4  ;;  %107 = vmatpush.msra.mxu0 %v1193_v4  ;;  %v36_v26 = vld [vmem:[%s1710_s0 + $0x50] sm:$0xff]  ;;  %v37_v28 = vld [vmem:[%s1710_s0 + $0x58] sm:$0xff]  ;;  %v1006_v29 = vld [vmem:[%s1710_s0 + $0xe0] sm:$0xff] }
   0xb   :  { %1010 = vmatmul.msk.f32.vlgmr.msra.gmra.mxu1 %vm43_vm0, %v994_v5  ;;  %978 = vmatmul.msk.f32.vlgmr.msra.gmra.mxu0 %vm43_vm0, %v26_v6  ;;  %v38_v30 = vld [vmem:[%s1710_s0 + $0x60] sm:$0xff]  ;;  %v1007_v31 = vld [vmem:[%s1710_s0 + $0xe8] sm:$0xff]  ;;  %v1008_v33 = vld [vmem:[%s1710_s0 + $0xf0] sm:$0xff] }
   0xc   :  { %v39_v32 = vld [vmem:[%s1710_s0 + $0x68] sm:$0xff]  ;;  %v40_v34 = vld [vmem:[%s1710_s0 + $0x70] sm:$0xff]  ;;  %v1009_v35 = vld [vmem:[%s1710_s0 + $0xf8] sm:$0xff] }
   0xd   :  { %v41_v36 = vld [vmem:[%s1710_s0 + $0x78] sm:$0xff] }
  0x13   :  { %1011 = vmatmul.msk.f32.gmra.mxu1 %vm43_vm0, %v995_v7  ;;  %979 = vmatmul.msk.f32.gmra.mxu0 %vm43_vm0, %v27_v8  ;;  %v1358_v8 = vld [vmem:[%s1711_s4] ss:$0 sm:$0xff] }
  0x1b   :  { %1012 = vmatmul.msk.f32.gmra.mxu1 %vm43_vm0, %v996_v9  ;;  %980 = vmatmul.msk.f32.gmra.mxu0 %vm43_vm0, %v28_v10 }
  0x23   :  { %1013 = vmatmul.msk.f32.gmra.mxu1 %vm43_vm0, %v997_v11  ;;  %981 = vmatmul.msk.f32.gmra.mxu0 %vm43_vm0, %v29_v12 }
  0x2b   :  { %1014 = vmatmul.msk.f32.gmra.mxu1 %vm43_vm0, %v998_v13  ;;  %982 = vmatmul.msk.f32.gmra.mxu0 %vm43_vm0, %v30_v14 }
  0x33   :  { %1015 = vmatmul.msk.f32.gmra.mxu1 %vm43_vm0, %v999_v15  ;;  %983 = vmatmul.msk.f32.gmra.mxu0 %vm43_vm0, %v31_v16 }
  0x3b   :  { %1016 = vmatmul.msk.f32.gmra.mxu1 %vm43_vm0, %v1000_v17  ;;  %984 = vmatmul.msk.f32.gmra.mxu0 %vm43_vm0, %v32_v18 }
  0x43   :  { %1017 = vmatmul.msk.f32.gmra.mxu1 %vm43_vm0, %v1001_v19  ;;  %985 = vmatmul.msk.f32.gmra.mxu0 %vm43_vm0, %v33_v20 }
  0x4b   :  { %1018 = vmatmul.msk.f32.gmra.mxu1 %vm43_vm0, %v1002_v21  ;;  %986 = vmatmul.msk.f32.gmra.mxu0 %vm43_vm0, %v34_v22 }
  0x53   :  { %1019 = vmatmul.msk.f32.gmra.mxu1 %vm43_vm0, %v1003_v23  ;;  %987 = vmatmul.msk.f32.gmra.mxu0 %vm43_vm0, %v35_v24 }
  0x5b   :  { %1020 = vmatmul.msk.f32.gmra.mxu1 %vm43_vm0, %v1004_v25  ;;  %988 = vmatmul.msk.f32.gmra.mxu0 %vm43_vm0, %v36_v26 }
  0x63   :  { %1021 = vmatmul.msk.f32.gmra.mxu1 %vm43_vm0, %v1005_v27  ;;  %989 = vmatmul.msk.f32.gmra.mxu0 %vm43_vm0, %v37_v28 }
  0x6b   :  { %1022 = vmatmul.msk.f32.gmra.mxu1 %vm43_vm0, %v1006_v29  ;;  %990 = vmatmul.msk.f32.gmra.mxu0 %vm43_vm0, %v38_v30 }
  0x73   :  { %1023 = vmatmul.msk.f32.gmra.mxu1 %vm43_vm0, %v1007_v31  ;;  %991 = vmatmul.msk.f32.gmra.mxu0 %vm43_vm0, %v39_v32 }
  0x7b   :  { %1024 = vmatmul.msk.f32.gmra.mxu1 %vm43_vm0, %v1008_v33  ;;  %992 = vmatmul.msk.f32.gmra.mxu0 %vm43_vm0, %v40_v34 }
  0x83   :  { %1025 = vmatmul.msk.f32.gmra.mxu1 %vm43_vm0, %v1009_v35  ;;  %993 = vmatmul.msk.f32.gmra.mxu0 %vm43_vm0, %v41_v36 }
  0x88   :  { %v1329_v37 = vpop.f32.mrf.mxu1  ;;  %v1331_v38 = vpop.f32.mrf.mxu0 }
  0x90   :  { %v1333_v39 = vpop.f32.mrf.mxu1  ;;  %v1335_v40 = vpop.f32.mrf.mxu0 }
  0x98   :  { %v1337_v41 = vpop.f32.mrf.mxu1  ;;  %v1339_v42 = vpop.f32.mrf.mxu0 }
  0xa0   :  { %v1341_v43 = vpop.f32.mrf.mxu1  ;;  %v1343_v44 = vpop.f32.mrf.mxu0 }
  0xa8   :  { %v1345_v45 = vpop.f32.mrf.mxu1  ;;  %v1347_v46 = vpop.f32.mrf.mxu0 }
  0xb0   :  { %v1349_v47 = vpop.f32.mrf.mxu1  ;;  %v1351_v48 = vpop.f32.mrf.mxu0 }
  0xb8   :  { %v1353_v49 = vpop.f32.mrf.mxu1  ;;  %v127_v50 = vpop.f32.mrf.mxu0 }
  0xc0   :  { %v277_v51 = vpop.f32.mrf.mxu1  ;;  %v130_v52 = vpop.f32.mrf.mxu0 }
  0xc8   :  { %v280_v53 = vpop.f32.mrf.mxu1  ;;  %v133_v54 = vpop.f32.mrf.mxu0 }
  0xc9   :  { %v134_v33 = vadd.f32 %v1358_v8, %v133_v54 }
  0xd0   :  { %v283_v55 = vpop.f32.mrf.mxu1  ;;  %v136_v56 = vpop.f32.mrf.mxu0 }
  0xd1   :  { %v137_v29 = vadd.f32 %v1358_v8, %v136_v56  ;;  %v284_v34 = vadd.f32 %v1358_v8, %v283_v55  ;;  %v125_v55 = vadd.f32 %v1358_v8, %v1351_v48  ;;  %v119_v48 = vadd.f32 %v1358_v8, %v1343_v44 }
  0xd2   :  { %v113_v44 = vadd.f32 %v1358_v8, %v1335_v40  ;;  %v257_v40 = vadd.f32 %v1358_v8, %v1329_v37  ;;  %v1027_v37 = vld [vmem:[%s1710_s0 + $0x100] sm:$0xff] }
  0xd3   :  { %v313_v54 = vmax.f32 %v284_v34, 0.0  ;;  %v1042_v34 = vld [vmem:[%s1710_s0 + $0x178] sm:$0xff] }
  0xd8   :  { %v286_v57 = vpop.f32.mrf.mxu1  ;;  %v139_v58 = vpop.f32.mrf.mxu0 }
  0xd9   :  { %v140_v25 = vadd.f32 %v1358_v8, %v139_v58  ;;  %v287_v30 = vadd.f32 %v1358_v8, %v286_v57  ;;  %v131_v58 = vadd.f32 %v1358_v8, %v130_v52  ;;  %v128_v57 = vadd.f32 %v1358_v8, %v127_v50 }
  0xda   :  { %v275_v52 = vadd.f32 %v1358_v8, %v1353_v49  ;;  %v272_v50 = vadd.f32 %v1358_v8, %v1349_v47  ;;  %v269_v49 = vadd.f32 %v1358_v8, %v1345_v45  ;;  %v266_v47 = vadd.f32 %v1358_v8, %v1341_v43 }
  0xdb   :  { %v167_v35 = vmax.f32 %v140_v25, 0.0  ;;  %v314_v56 = vmax.f32 %v287_v30, 0.0  ;;  %v263_v45 = vadd.f32 %v1358_v8, %v1337_v41  ;;  %v260_v43 = vadd.f32 %v1358_v8, %v1333_v39  ;;  %v1026_v39 = vld [vmem:[%s1712_s1 + $0x2] sm:$0x3]  ;;  %v1033_v25 = vld [vmem:[%s1710_s0 + $0x130] sm:$0xff]  ;;  %v1038_v30 = vld [vmem:[%s1710_s0 + $0x158] sm:$0xff] }
  0xe0   :  { %v289_v59 = vpop.f32.mrf.mxu1  ;;  %v142_v60 = vpop.f32.mrf.mxu0 }
  0xe1   :  { %v143_v21 = vadd.f32 %v1358_v8, %v142_v60  ;;  %v290_v26 = vadd.f32 %v1358_v8, %v289_v59  ;;  %v281_v59 = vadd.f32 %v1358_v8, %v280_v53  ;;  %v166_v60 = vmax.f32 %v137_v29, 0.0  ;;  %v1037_v29 = vld [vmem:[%s1710_s0 + $0x150] sm:$0xff] }
  0xe3   :  { %v168_v31 = vmax.f32 %v143_v21, 0.0  ;;  %v315_v36 = vmax.f32 %v290_v26, 0.0  ;;  %v312_v53 = vmax.f32 %v281_v59, 0.0  ;;  %v1029_v21 = vld [vmem:[%s1710_s0 + $0x110] sm:$0xff]  ;;  %v1034_v26 = vld [vmem:[%s1710_s0 + $0x138] sm:$0xff] }
  0xe8   :  { %v292_v61 = vpop.f32.mrf.mxu1  ;;  %v145_v62 = vpop.f32.mrf.mxu0 }
  0xe9   :  { %v146_v16 = vadd.f32 %v1358_v8, %v145_v62  ;;  %v293_v22 = vadd.f32 %v1358_v8, %v292_v61  ;;  %v278_v61 = vadd.f32 %v1358_v8, %v277_v51  ;;  %v165_v62 = vmax.f32 %v134_v33, 0.0  ;;  %v1041_v33 = vld [vmem:[%s1710_s0 + $0x170] sm:$0xff] }
  0xea   :  { %v163_v51 = vmax.f32 %v128_v57, 0.0 }
  0xeb   :  { %v169_v27 = vmax.f32 %v146_v16, 0.0  ;;  %v316_v32 = vmax.f32 %v293_v22, 0.0  ;;  %v158_v16 = vmax.f32 %v113_v44, 0.0  ;;  %v1030_v22 = vld [vmem:[%s1710_s0 + $0x118] sm:$0xff] }
  0xf0   :  { %v295_v63 = vpop.f32.mrf.mxu1  ;;  %v148_v5 = vpop.f32.mrf.mxu0 }
  0xf1   :  { %v149_v12 = vadd.f32 %v1358_v8, %v148_v5  ;;  %v296_v17 = vadd.f32 %v1358_v8, %v295_v63  ;;  %v164_v63 = vmax.f32 %v131_v58, 0.0  ;;  %v122_v5 = vadd.f32 %v1358_v8, %v1347_v46 }
  0xf2   :  { %v116_v46 = vadd.f32 %v1358_v8, %v1339_v42  ;;  %v110_v42 = vadd.f32 %v1358_v8, %v1331_v38  ;;  %v173_v38 = vld [vmem:[%s1712_s1] sm:$0x3] }
  0xf3   :  { %v170_v23 = vmax.f32 %v149_v12, 0.0  ;;  %v317_v28 = vmax.f32 %v296_v17, 0.0  ;;  %v160_v12 = vmax.f32 %v119_v48, 0.0  ;;  %v306_v17 = vmax.f32 %v263_v45, 0.0 }
  0xf4   :  { %v157_v41 = vmax.f32 %v110_v42, 0.0 }
  0xf8   :  { %v298_v6 = vpop.f32.mrf.mxu1  ;;  %v151_v7 = vpop.f32.mrf.mxu0 }
  0xf9   :  { %v152_v9 = vadd.f32 %v1358_v8, %v151_v7  ;;  %v299_v13 = vadd.f32 %v1358_v8, %v298_v6  ;;  %v311_v6 = vmax.f32 %v278_v61, 0.0  ;;  %v162_v7 = vmax.f32 %v125_v55, 0.0 }
  0xfb   :  { %v171_v18 = vmax.f32 %v152_v9, 0.0  ;;  %v318_v24 = vmax.f32 %v299_v13, 0.0  ;;  %v310_v9 = vmax.f32 %v275_v52, 0.0  ;;  %v308_v13 = vmax.f32 %v269_v49, 0.0 }
 0x100   :  { %v301_v10 = vpop.f32.mrf.mxu1  ;;  %v154_v11 = vpop.f32.mrf.mxu0 }
 0x101   :  { %v302_v14 = vadd.f32 %v1358_v8, %v301_v10  ;;  %v155_v15 = vadd.f32 %v1358_v8, %v154_v11  ;;  %v161_v10 = vmax.f32 %v122_v5, 0.0  ;;  %v309_v11 = vmax.f32 %v272_v50, 0.0 }
 0x103   :  { %v319_v19 = vmax.f32 %v302_v14, 0.0  ;;  %v172_v20 = vmax.f32 %v155_v15, 0.0  ;;  %v159_v14 = vmax.f32 %v116_v46, 0.0  ;;  %v307_v15 = vmax.f32 %v266_v47, 0.0 }
 0x105   :  { %322 = vmatpush.msra.mxu2 %v319_v19  ;;  %342 = vmatpush.msrb.mxu1 %v172_v20  ;;  %v304_v19 = vmax.f32 %v257_v40, 0.0  ;;  %v1028_v20 = vld [vmem:[%s1710_s0 + $0x108] sm:$0xff] }
 0x107   :  { %323 = vmatpush.msra.mxu2 %v318_v24  ;;  %343 = vmatpush.msrb.mxu1 %v171_v18  ;;  %v305_v18 = vmax.f32 %v260_v43, 0.0  ;;  %v1032_v24 = vld [vmem:[%s1710_s0 + $0x128] sm:$0xff] }
 0x109   :  { %324 = vmatpush.msra.mxu2 %v317_v28  ;;  %344 = vmatpush.msrb.mxu1 %v170_v23  ;;  %v1031_v23 = vld [vmem:[%s1710_s0 + $0x120] sm:$0xff]  ;;  %v1036_v28 = vld [vmem:[%s1710_s0 + $0x148] sm:$0xff] }
 0x10b   :  { %325 = vmatpush.msra.mxu2 %v316_v32  ;;  %345 = vmatpush.msrb.mxu1 %v169_v27  ;;  %v1035_v27 = vld [vmem:[%s1710_s0 + $0x140] sm:$0xff]  ;;  %v1040_v32 = vld [vmem:[%s1710_s0 + $0x168] sm:$0xff] }
 0x10d   :  { %326 = vmatpush.msra.mxu2 %v315_v36  ;;  %346 = vmatpush.msrb.mxu1 %v168_v31  ;;  %v1039_v31 = vld [vmem:[%s1710_s0 + $0x160] sm:$0xff] }
 0x10f   :  { %327 = vmatpush.msra.mxu2 %v314_v56  ;;  %347 = vmatpush.msrb.mxu1 %v167_v35 }
 0x111   :  { %328 = vmatpush.msra.mxu2 %v313_v54  ;;  %348 = vmatpush.msrb.mxu1 %v166_v60 }
 0x113   :  { %329 = vmatpush.msra.mxu2 %v312_v53  ;;  %349 = vmatpush.msrb.mxu1 %v165_v62 }
 0x115   :  { %330 = vmatpush.msra.mxu2 %v311_v6  ;;  %350 = vmatpush.msrb.mxu1 %v164_v63 }
 0x117   :  { %331 = vmatpush.msra.mxu2 %v310_v9  ;;  %351 = vmatpush.msrb.mxu1 %v163_v51 }
 0x119   :  { %332 = vmatpush.msra.mxu2 %v309_v11  ;;  %352 = vmatpush.msrb.mxu1 %v162_v7 }
 0x11b   :  { %333 = vmatpush.msra.mxu2 %v308_v13  ;;  %353 = vmatpush.msrb.mxu1 %v161_v10 }
 0x11d   :  { %334 = vmatpush.msra.mxu2 %v307_v15  ;;  %354 = vmatpush.msrb.mxu1 %v160_v12 }
 0x11f   :  { %335 = vmatpush.msra.mxu2 %v306_v17  ;;  %355 = vmatpush.msrb.mxu1 %v159_v14 }
 0x121   :  { %336 = vmatpush.msra.mxu2 %v305_v18  ;;  %356 = vmatpush.msrb.mxu1 %v158_v16 }
 0x123   :  { %337 = vmatpush.msra.mxu2 %v304_v19  ;;  %357 = vmatpush.msrb.mxu1 %v157_v41 }
 0x124   :  { %358 = vmatmul.f32.vlgmr.msrb.gmra.mxu1 %v173_v38  ;;  %338 = vmatmul.f32.vlgmr.msra.gmra.mxu2 %v1026_v39 }
 0x125   :  { %438 = vmatpush.msrb.mxu2 %v1169_v0 }
 0x127   :  { %439 = vmatpush.msrb.mxu2 %v1174_v1 }
 0x129   :  { %440 = vmatpush.msrb.mxu2 %v1181_v2 }
 0x12b   :  { %441 = vmatpush.msrb.mxu2 %v1188_v3 }
 0x12d   :  { %442 = vmatpush.msrb.mxu2 %v1193_v4 }
 0x12e   :  { %1043 = vmatmul.msk.f32.vlgmr.msrb.gmra.mxu2 %vm43_vm0, %v1027_v37 }
 0x136   :  { %1044 = vmatmul.msk.f32.gmra.mxu2 %vm43_vm0, %v1028_v20 }
 0x13e   :  { %1045 = vmatmul.msk.f32.gmra.mxu2 %vm43_vm0, %v1029_v21 }
 0x146   :  { %1046 = vmatmul.msk.f32.gmra.mxu2 %vm43_vm0, %v1030_v22 }
 0x14e   :  { %1047 = vmatmul.msk.f32.gmra.mxu2 %vm43_vm0, %v1031_v23 }
 0x156   :  { %1048 = vmatmul.msk.f32.gmra.mxu2 %vm43_vm0, %v1032_v24 }
 0x15e   :  { %1049 = vmatmul.msk.f32.gmra.mxu2 %vm43_vm0, %v1033_v25 }
 0x166   :  { %1050 = vmatmul.msk.f32.gmra.mxu2 %vm43_vm0, %v1034_v26  ;;  %v1059_v26 = vld [vmem:[%s1712_s1 + $0x4] sm:$0x3] }
 0x16e   :  { %1051 = vmatmul.msk.f32.gmra.mxu2 %vm43_vm0, %v1035_v27  ;;  %v1060_v27 = vld [vmem:[%s1710_s0 + $0x180] sm:$0xff] }
 0x176   :  { %1052 = vmatmul.msk.f32.gmra.mxu2 %vm43_vm0, %v1036_v28  ;;  %v1061_v28 = vld [vmem:[%s1710_s0 + $0x188] sm:$0xff] }
 0x17e   :  { %1053 = vmatmul.msk.f32.gmra.mxu2 %vm43_vm0, %v1037_v29  ;;  %v1067_v29 = vld [vmem:[%s1710_s0 + $0x1b8] sm:$0xff] }
 0x186   :  { %1054 = vmatmul.msk.f32.gmra.mxu2 %vm43_vm0, %v1038_v30  ;;  %v1068_v30 = vld [vmem:[%s1710_s0 + $0x1c0] sm:$0xff] }
 0x18e   :  { %1055 = vmatmul.msk.f32.gmra.mxu2 %vm43_vm0, %v1039_v31  ;;  %v1069_v31 = vld [vmem:[%s1710_s0 + $0x1c8] sm:$0xff] }
 0x196   :  { %1056 = vmatmul.msk.f32.gmra.mxu2 %vm43_vm0, %v1040_v32  ;;  %v1070_v32 = vld [vmem:[%s1710_s0 + $0x1d0] sm:$0xff] }
 0x19e   :  { %1057 = vmatmul.msk.f32.gmra.mxu2 %vm43_vm0, %v1041_v33  ;;  %v1071_v33 = vld [vmem:[%s1710_s0 + $0x1d8] sm:$0xff] }
 0x1a6   :  { %1058 = vmatmul.msk.f32.gmra.mxu2 %vm43_vm0, %v1042_v34  ;;  %v1072_v34 = vld [vmem:[%s1710_s0 + $0x1e0] sm:$0xff] }
 0x1a7   :  { %v1480_v35 = vpop.f32.mrf.mxu2 }
 0x1b1   :  { %v444_v36 = vpop.f32.mrf.mxu2 }
 0x1b2   :  { %v445_v22 = vadd.f32 %v1358_v8, %v444_v36  ;;  %v1073_v36 = vld [vmem:[%s1710_s0 + $0x1e8] sm:$0xff] }
 0x1b4   :  { %v492_v25 = vmax.f32 %v445_v22, 0.0 }
 0x1b9   :  { %v447_v58 = vpop.f32.mrf.mxu2 }
 0x1ba   :  { %v448_v20 = vadd.f32 %v1358_v8, %v447_v58  ;;  %v1074_v58 = vld [vmem:[%s1710_s0 + $0x1f0] sm:$0xff] }
 0x1bc   :  { %v493_v24 = vmax.f32 %v448_v20, 0.0 }
 0x1c1   :  { %v450_v59 = vpop.f32.mrf.mxu2 }
 0x1c2   :  { %v451_v39 = vadd.f32 %v1358_v8, %v450_v59  ;;  %v359_v59 = vpop.f32.mrf.mxu1 }
 0x1c4   :  { %v494_v23 = vmax.f32 %v451_v39, 0.0 }
 0x1c9   :  { %v453_v60 = vpop.f32.mrf.mxu2 }
 0x1ca   :  { %v454_v19 = vadd.f32 %v1358_v8, %v453_v60  ;;  %v1075_v60 = vld [vmem:[%s1710_s0 + $0x1f8] sm:$0xff] }
 0x1cc   :  { %v495_v21 = vmax.f32 %v454_v19, 0.0 }
 0x1d1   :  { %v456_v56 = vpop.f32.mrf.mxu2 }
 0x1d2   :  { %v457_v41 = vadd.f32 %v1358_v8, %v456_v56  ;;  %v360_v56 = vadd.f32 %v359_v59, %v1480_v35 }
 0x1d4   :  { %v496_v37 = vmax.f32 %v457_v41, 0.0 }
 0x1d9   :  { %v459_v57 = vpop.f32.mrf.mxu2 }
 0x1da   :  { %v460_v16 = vadd.f32 %v1358_v8, %v459_v57 }
 0x1dc   :  { %v497_v38 = vmax.f32 %v460_v16, 0.0 }
 0x1e1   :  { %v462_v61 = vpop.f32.mrf.mxu2 }
 0x1e2   :  { %v463_v15 = vadd.f32 %v1358_v8, %v462_v61 }
 0x1e4   :  { %v498_v18 = vmax.f32 %v463_v15, 0.0 }
 0x1e9   :  { %v465_v62 = vpop.f32.mrf.mxu2 }
 0x1ea   :  { %v466_v43 = vadd.f32 %v1358_v8, %v465_v62 }
 0x1ec   :  { %v499_v17 = vmax.f32 %v466_v43, 0.0 }
 0x1f1   :  { %v468_v54 = vpop.f32.mrf.mxu2 }
 0x1f2   :  { %v469_v13 = vadd.f32 %v1358_v8, %v468_v54 }
 0x1f4   :  { %v500_v40 = vmax.f32 %v469_v13, 0.0 }
 0x1f9   :  { %v471_v55 = vpop.f32.mrf.mxu2 }
 0x1fa   :  { %v472_v45 = vadd.f32 %v1358_v8, %v471_v55 }
 0x1fc   :  { %v501_v14 = vmax.f32 %v472_v45, 0.0  ;;  %v703_v45 = vld [vmem:[%s1713_s3 + $0x18] sm:$0xff] }
 0x1fd   :  { %722 = vmatpush.msra.mxu1 %v703_v45  ;;  %v1094_v45 = vld [vmem:[%s1713_s3 + $0x20] sm:$0xff] }
 0x201   :  { %v474_v52 = vpop.f32.mrf.mxu2 }
 0x202   :  { %v475_v11 = vadd.f32 %v1358_v8, %v474_v52 }
 0x204   :  { %v502_v42 = vmax.f32 %v475_v11, 0.0 }
 0x209   :  { %v477_v63 = vpop.f32.mrf.mxu2 }
 0x20a   :  { %v478_v47 = vadd.f32 %v1358_v8, %v477_v63 }
 0x20c   :  { %v503_v12 = vmax.f32 %v478_v47, 0.0 }
 0x211   :  { %v480_v53 = vpop.f32.mrf.mxu2 }
 0x212   :  { %v481_v9 = vadd.f32 %v1358_v8, %v480_v53 }
 0x214   :  { %v504_v44 = vmax.f32 %v481_v9, 0.0 }
 0x219   :  { %v483_v5 = vpop.f32.mrf.mxu2 }
 0x21a   :  { %v484_v49 = vadd.f32 %v1358_v8, %v483_v5 }
 0x21c   :  { %v505_v10 = vmax.f32 %v484_v49, 0.0 }
 0x221   :  { %v486_v50 = vpop.f32.mrf.mxu2 }
 0x222   :  { %v487_v6 = vadd.f32 %v1358_v8, %v486_v50 }
 0x224   :  { %v506_v46 = vmax.f32 %v487_v6, 0.0 }
 0x229   :  { %v489_v51 = vpop.f32.mrf.mxu2 }
 0x22a   :  { %v490_v48 = vadd.f32 %v1358_v8, %v489_v51 }
 0x22c   :  { %v507_v7 = vmax.f32 %v490_v48, 0.0 }
 0x22e   :  { %510 = vmatpush.msra.mxu3 %v507_v7 }
 0x230   :  { %511 = vmatpush.msra.mxu3 %v506_v46 }
 0x232   :  { %512 = vmatpush.msra.mxu3 %v505_v10 }
 0x234   :  { %513 = vmatpush.msra.mxu3 %v504_v44 }
 0x236   :  { %514 = vmatpush.msra.mxu3 %v503_v12  ;;  %v702_v12 = vld [vmem:[%s1713_s3 + $0x10] sm:$0xff] }
 0x237   :  { %723 = vmatpush.msra.mxu1 %v702_v12 }
 0x238   :  { %515 = vmatpush.msra.mxu3 %v502_v42 }
 0x23a   :  { %516 = vmatpush.msra.mxu3 %v501_v14 }
 0x23c   :  { %517 = vmatpush.msra.mxu3 %v500_v40 }
 0x23e   :  { %518 = vmatpush.msra.mxu3 %v499_v17 }
 0x240   :  { %519 = vmatpush.msra.mxu3 %v498_v18 }
 0x242   :  { %520 = vmatpush.msra.mxu3 %v497_v38 }
 0x244   :  { %521 = vmatpush.msra.mxu3 %v496_v37 }
 0x246   :  { %522 = vmatpush.msra.mxu3 %v495_v21 }
 0x248   :  { %523 = vmatpush.msra.mxu3 %v494_v23 }
 0x24a   :  { %524 = vmatpush.msra.mxu3 %v493_v24 }
 0x24c   :  { %525 = vmatpush.msra.mxu3 %v492_v25 }
 0x24d   :  { %526 = vmatmul.f32.vlgmr.msra.gmra.mxu3 %v1059_v26 }
 0x24e   :  { %607 = vmatpush.msrb.mxu3 %v1169_v0  ;;  %v1062_v0 = vld [vmem:[%s1710_s0 + $0x190] sm:$0xff] }
 0x250   :  { %608 = vmatpush.msrb.mxu3 %v1174_v1  ;;  %v1063_v1 = vld [vmem:[%s1710_s0 + $0x198] sm:$0xff] }
 0x252   :  { %609 = vmatpush.msrb.mxu3 %v1181_v2  ;;  %v1064_v2 = vld [vmem:[%s1710_s0 + $0x1a0] sm:$0xff] }
 0x254   :  { %610 = vmatpush.msrb.mxu3 %v1188_v3  ;;  %v1065_v3 = vld [vmem:[%s1710_s0 + $0x1a8] sm:$0xff] }
 0x256   :  { %611 = vmatpush.msrb.mxu3 %v1193_v4  ;;  %v1066_v4 = vld [vmem:[%s1710_s0 + $0x1b0] sm:$0xff] }
 0x257   :  { %1076 = vmatmul.msk.f32.vlgmr.msrb.gmra.mxu3 %vm43_vm0, %v1060_v27 }
 0x25f   :  { %1077 = vmatmul.msk.f32.gmra.mxu3 %vm43_vm0, %v1061_v28 }
 0x267   :  { %1078 = vmatmul.msk.f32.gmra.mxu3 %vm43_vm0, %v1062_v0 }
 0x26f   :  { %1079 = vmatmul.msk.f32.gmra.mxu3 %vm43_vm0, %v1063_v1 }
 0x277   :  { %1080 = vmatmul.msk.f32.gmra.mxu3 %vm43_vm0, %v1064_v2 }
 0x27f   :  { %1081 = vmatmul.msk.f32.gmra.mxu3 %vm43_vm0, %v1065_v3 }
 0x287   :  { %1082 = vmatmul.msk.f32.gmra.mxu3 %vm43_vm0, %v1066_v4 }
 0x28f   :  { %1083 = vmatmul.msk.f32.gmra.mxu3 %vm43_vm0, %v1067_v29  ;;  %v1092_v29 = vld [vmem:[%s1712_s1 + $0x6] sm:$0x3] }
 0x297   :  { %1084 = vmatmul.msk.f32.gmra.mxu3 %vm43_vm0, %v1068_v30  ;;  %v701_v30 = vld [vmem:[%s1713_s3 + $0x8] sm:$0xff] }
 0x298   :  { %724 = vmatpush.msra.mxu1 %v701_v30 }
 0x29f   :  { %1085 = vmatmul.msk.f32.gmra.mxu3 %vm43_vm0, %v1069_v31 }
 0x2a7   :  { %1086 = vmatmul.msk.f32.gmra.mxu3 %vm43_vm0, %v1070_v32 }
 0x2af   :  { %1087 = vmatmul.msk.f32.gmra.mxu3 %vm43_vm0, %v1071_v33  ;;  %v1135_v33 = vmov 2.0  }
 0x2b0   :  { %1127 = vrcp.f32 %v1135_v33  ;;  %v1101_v33 = vld [vmem:[%s1713_s3 + $0x50] sm:$0xff] }
 0x2b7   :  { %1088 = vmatmul.msk.f32.gmra.mxu3 %vm43_vm0, %v1072_v34  ;;  %v1128_v34 = vpop.eup %1127 }
 0x2b8   :  { %vm745_vm3 = vweird.f32 %v1128_v34 }
 0x2bf   :  { %1089 = vmatmul.msk.f32.gmra.mxu3 %vm43_vm0, %v1073_v36  ;;  %v1116_v36 = vld [vmem:[%s1711_s4 + $0x1] ss:$0 sm:$0xff] }
 0x2c7   :  { %1090 = vmatmul.msk.f32.gmra.mxu3 %vm43_vm0, %v1074_v58  ;;  %v741_v58 = vmul.f32 2.0, %v1128_v34 }
 0x2cf   :  { %1091 = vmatmul.msk.f32.gmra.mxu3 %vm43_vm0, %v1075_v60 }
 0x2d0   :  { %v527_v57 = vpop.f32.mrf.mxu3 }
 0x2d1   :  { %v1571_v61 = vadd.f32 %v527_v57, %v360_v56  ;;  %v742_v56 = vsub.f32 1.0, %v741_v58 }
 0x2da   :  { %v613_v62 = vpop.f32.mrf.mxu3 }
 0x2db   :  { %v614_v1 = vadd.f32 %v1358_v8, %v613_v62 }
 0x2dd   :  { %v661_v4 = vmax.f32 %v614_v1, 0.0 }
 0x2e2   :  { %v616_v54 = vpop.f32.mrf.mxu3 }
 0x2e3   :  { %v617_v28 = vadd.f32 %v1358_v8, %v616_v54  ;;  %v743_v54 = vmul.f32 %v1128_v34, %v742_v56 }
 0x2e5   :  { %v662_v3 = vmax.f32 %v617_v28, 0.0 }
 0x2ea   :  { %v619_v55 = vpop.f32.mrf.mxu3 }
 0x2eb   :  { %v620_v26 = vadd.f32 %v1358_v8, %v619_v55 }
 0x2ed   :  { %v663_v2 = vmax.f32 %v620_v26, 0.0 }
 0x2f2   :  { %v622_v52 = vpop.f32.mrf.mxu3 }
 0x2f3   :  { %v623_v24 = vadd.f32 %v1358_v8, %v622_v52  ;;  %v744_v52 = vadd.f32 %v1128_v34, %v743_v54 }
 0x2f5   :  { %v664_v0 = vmax.f32 %v623_v24, 0.0 }
 0x2fa   :  { %v625_v63 = vpop.f32.mrf.mxu3 }
 0x2fb   :  { %v626_v22 = vadd.f32 %v1358_v8, %v625_v63 }
 0x2fd   :  { %v665_v27 = vmax.f32 %v626_v22, 0.0 }
 0x302   :  { %v628_v53 = vpop.f32.mrf.mxu3 }
 0x303   :  { %v629_v20 = vadd.f32 %v1358_v8, %v628_v53 }
 0x305   :  { %v666_v25 = vmax.f32 %v629_v20, 0.0 }
 0x30a   :  { %v631_v5 = vpop.f32.mrf.mxu3 }
 0x30b   :  { %v632_v39 = vadd.f32 %v1358_v8, %v631_v5  ;;  %v1610_v5 = vsel %vm745_vm3, %v1128_v34, %v744_v52 }
 0x30d   :  { %v667_v23 = vmax.f32 %v632_v39, 0.0 }
 0x312   :  { %v634_v50 = vpop.f32.mrf.mxu3 }
 0x313   :  { %v635_v19 = vadd.f32 %v1358_v8, %v634_v50 }
 0x315   :  { %v668_v21 = vmax.f32 %v635_v19, 0.0 }
 0x31a   :  { %v637_v51 = vpop.f32.mrf.mxu3 }
 0x31b   :  { %v638_v41 = vadd.f32 %v1358_v8, %v637_v51 }
 0x31d   :  { %v669_v37 = vmax.f32 %v638_v41, 0.0  ;;  %v1117_v41 = vld [vmem:[%s1711_s4 + $0x2] ss:$0 sm:$0xff] }
 0x322   :  { %v640_v6 = vpop.f32.mrf.mxu3 }
 0x323   :  { %v641_v16 = vadd.f32 %v1358_v8, %v640_v6 }
 0x325   :  { %v670_v38 = vmax.f32 %v641_v16, 0.0 }
 0x32a   :  { %v643_v48 = vpop.f32.mrf.mxu3 }
 0x32b   :  { %v644_v15 = vadd.f32 %v1358_v8, %v643_v48 }
 0x32d   :  { %v671_v18 = vmax.f32 %v644_v15, 0.0 }
 0x332   :  { %v646_v49 = vpop.f32.mrf.mxu3 }
 0x333   :  { %v647_v43 = vadd.f32 %v1358_v8, %v646_v49 }
 0x335   :  { %v672_v17 = vmax.f32 %v647_v43, 0.0 }
 0x33a   :  { %v649_v7 = vpop.f32.mrf.mxu3 }
 0x33b   :  { %v650_v13 = vadd.f32 %v1358_v8, %v649_v7 }
 0x33d   :  { %v673_v40 = vmax.f32 %v650_v13, 0.0 }
 0x342   :  { %v652_v9 = vpop.f32.mrf.mxu3 }
 0x343   :  { %v653_v11 = vadd.f32 %v1358_v8, %v652_v9 }
 0x345   :  { %v674_v14 = vmax.f32 %v653_v11, 0.0  ;;  %v1095_v11 = vld [vmem:[%s1713_s3 + $0x28] sm:$0xff] }
 0x34a   :  { %v655_v35 = vpop.f32.mrf.mxu3 }
 0x34b   :  { %v656_v47 = vadd.f32 %v1358_v8, %v655_v35  ;;  %v1097_v35 = vld [vmem:[%s1713_s3 + $0x38] sm:$0xff] }
 0x34d   :  { %v675_v42 = vmax.f32 %v656_v47, 0.0  ;;  %v1096_v47 = vld [vmem:[%s1713_s3 + $0x30] sm:$0xff] }
 0x352   :  { %v658_v46 = vpop.f32.mrf.mxu3 }
 0x353   :  { %v659_v10 = vadd.f32 %v1358_v8, %v658_v46  ;;  %v700_v8 = vld [vmem:[%s1713_s3] sm:$0xff] }
 0x354   :  { %725 = vmatpush.msra.mxu1 %v700_v8 }
 0x355   :  { %v676_v44 = vmax.f32 %v659_v10, 0.0 }
 0x357   :  { %679 = vmatpush.msrb.mxu0 %v676_v44 }
 0x359   :  { %680 = vmatpush.msrb.mxu0 %v675_v42 }
 0x35b   :  { %681 = vmatpush.msrb.mxu0 %v674_v14 }
 0x35d   :  { %682 = vmatpush.msrb.mxu0 %v673_v40 }
 0x35f   :  { %683 = vmatpush.msrb.mxu0 %v672_v17 }
 0x361   :  { %684 = vmatpush.msrb.mxu0 %v671_v18 }
 0x363   :  { %685 = vmatpush.msrb.mxu0 %v670_v38  ;;  %v1118_v38 = vld [vmem:[%s1711_s4 + $0x3] ss:$0 sm:$0xff] }
 0x365   :  { %686 = vmatpush.msrb.mxu0 %v669_v37 }
 0x367   :  { %687 = vmatpush.msrb.mxu0 %v668_v21  ;;  %v1119_v21 = vld [vmem:[%s1711_s4 + $0x4] ss:$0 sm:$0xff] }
 0x369   :  { %688 = vmatpush.msrb.mxu0 %v667_v23 }
 0x36b   :  { %689 = vmatpush.msrb.mxu0 %v666_v25 }
 0x36d   :  { %690 = vmatpush.msrb.mxu0 %v665_v27 }
 0x36f   :  { %691 = vmatpush.msrb.mxu0 %v664_v0 }
 0x371   :  { %692 = vmatpush.msrb.mxu0 %v663_v2 }
 0x373   :  { %693 = vmatpush.msrb.mxu0 %v662_v3 }
 0x375   :  { %694 = vmatpush.msrb.mxu0 %v661_v4 }
 0x376   :  { %695 = vmatmul.f32.vlgmr.msrb.gmra.mxu0 %v1092_v29 }
 0x377   :  { %797 = vmatpush.msra.mxu0 %v1097_v35 }
 0x379   :  { %798 = vmatpush.msra.mxu0 %v1096_v47 }
 0x37b   :  { %799 = vmatpush.msra.mxu0 %v1095_v11 }
 0x37d   :  { %800 = vmatpush.msra.mxu0 %v1094_v45 }
 0x3f3   :  { %v696_v31 = vpop.f32.mrf.mxu0 }
 0x3f4   :  { %v699_v32 = vadd.f32 %v696_v31, %v1571_v61  ;;  %v1102_v31 = vld [vmem:[%s1713_s3 + $0x58] sm:$0xff] }
 0x3f5   :  { %864 = vmatpush.msrb.mxu1 %v1102_v31  ;;  %v1110_v31 = vld [vmem:[%s1713_s3 + $0x88] sm:$0xff] }
 0x3f6   :  { %1093 = vmatmul.msk.f32.vlgmr.msra.gmra.mxu1 %vm706_vm1, %v699_v32 }
 0x3f7   :  { %865 = vmatpush.msrb.mxu1 %v1101_v33  ;;  %v1125_v33 = vld [vmem:[%s1711_s4 + $0xa] ss:$0 sm:$0xff] }
 0x473   :  { %v727_v59 = vpop.f32.mrf.mxu1 }
 0x474   :  { %v728_v60 = vadd.f32 %v1116_v36, %v727_v59  ;;  %v1100_v36 = vld [vmem:[%s1713_s3 + $0x48] sm:$0xff]  ;;  %v1099_v59 = vld [vmem:[%s1713_s3 + $0x40] sm:$0xff] }
 0x475   :  { %866 = vmatpush.msrb.mxu1 %v1100_v36 }
 0x476   :  { %v733_v57 = vsel %vm732_vm2, %v728_v60, 0.0 }
 0x477   :  { %v734_v62 = vrot.slane %v733_v57, 4  ;;  %867 = vmatpush.msrb.mxu1 %v1099_v59  ;;  %v1126_v59 = vld [vmem:[%s1711_s4 + $0xb] ss:$0 sm:$0xff] }
 0x479   :  { %v735_v55 = vadd.f32 %v734_v62, %v733_v57 }
 0x47b   :  { %v736_v61 = vrot.slane %v735_v55, 2 }
 0x47d   :  { %v737_v63 = vadd.f32 %v736_v61, %v735_v55 }
 0x47f   :  { %v738_v53 = vrot.slane %v737_v63, 1 }
 0x481   :  { %v739_v50 = vadd.f32 %v738_v53, %v737_v63  ;;  %v1120_v53 = vld [vmem:[%s1711_s4 + $0x5] ss:$0 sm:$0xff] }
 0x483   :  { %v747_v51 = vmul.f32 %v1610_v5, %v739_v50 }
 0x485   :  { %v748_v6 = vsub.f32 %v728_v60, %v747_v51 }
 0x487   :  { %v749_v48 = vmul.f32 %v748_v6, %v748_v6 }
 0x489   :  { %v750_v49 = vsel %vm732_vm2, %v749_v48, 0.0 }
 0x48a   :  { %v751_v7 = vrot.slane %v750_v49, 4 }
 0x48c   :  { %v752_v9 = vadd.f32 %v751_v7, %v750_v49 }
 0x48e   :  { %v753_v46 = vrot.slane %v752_v9, 2 }
 0x490   :  { %v754_v10 = vadd.f32 %v753_v46, %v752_v9  ;;  %v1122_v9 = vld [vmem:[%s1711_s4 + $0x7] ss:$0 sm:$0xff] }
 0x492   :  { %v755_v44 = vrot.slane %v754_v10, 1 }
 0x494   :  { %v756_v12 = vadd.f32 %v755_v44, %v754_v10 }
 0x496   :  { %v757_v13 = vmul.f32 %v756_v12, %v1610_v5 }
 0x498   :  { %v758_v42 = vadd.f32 1e-05, %v757_v13 }
 0x49a   :  { %1129 = vrsqrt.f32 %v758_v42  ;;  %vm765_vm5 = vweird.f32 %v758_v42 }
 0x4a0   :  { %v1130_v43 = vpop.eup %1129 }
 0x4a1   :  { %v760_v14 = vmul.f32 %v1130_v43, %v758_v42  ;;  %vm766_vm4 = vweird.f32 %v1130_v43 }
 0x4a2   :  { %vm767_vm6 = vmor %vm765_vm5, %vm766_vm4 }
 0x4a3   :  { %v761_v15 = vmul.f32 %v1130_v43, %v760_v14 }
 0x4a5   :  { %v762_v40 = vmul.f32 0.5, %v761_v15 }
 0x4a7   :  { %v763_v16 = vsub.f32 1.5, %v762_v40 }
 0x4a9   :  { %v764_v17 = vmul.f32 %v1130_v43, %v763_v16 }
 0x4ab   :  { %v768_v18 = vsel %vm767_vm6, %v1130_v43, %v764_v17  ;;  %v1107_v17 = vld [vmem:[%s1713_s3 + $0x78] sm:$0xff] }
 0x4ac   :  { %v769_v19 = vmul.f32 %v768_v18, %v748_v6  ;;  %v1121_v6 = vld [vmem:[%s1711_s4 + $0x6] ss:$0 sm:$0xff]  ;;  %931 = vmatpush.msrb.mxu0 %v1107_v17  ;;  %v1106_v18 = vld [vmem:[%s1713_s3 + $0x70] sm:$0xff] }
 0x4ae   :  { %v771_v39 = vmul.f32 %v1117_v41, %v769_v19  ;;  %932 = vmatpush.msrb.mxu0 %v1106_v18 }
 0x4b0   :  { %v773_v37 = vadd.f32 %v1118_v38, %v771_v39  ;;  %v1105_v38 = vld [vmem:[%s1713_s3 + $0x68] sm:$0xff] }
 0x4b1   :  { %933 = vmatpush.msrb.mxu0 %v1105_v38 }
 0x4b2   :  { %v774_v20 = vmax.f32 %v773_v37, 0.0  ;;  %v1104_v37 = vld [vmem:[%s1713_s3 + $0x60] sm:$0xff] }
 0x4b3   :  { %934 = vmatpush.msrb.mxu0 %v1104_v37 }
 0x4b4   :  { %1098 = vmatmul.msk.f32.vlgmr.msra.gmra.mxu0 %vm706_vm1, %v774_v20 }
 0x531   :  { %v802_v22 = vpop.f32.mrf.mxu0 }
 0x532   :  { %v803_v23 = vadd.f32 %v1119_v21, %v802_v22  ;;  %v1112_v21 = vld [vmem:[%s1713_s3 + $0x98] sm:$0xff] }
 0x533   :  { %962 = vmatpush.msra.mxu1 %v1112_v21 }
 0x534   :  { %v807_v24 = vsel %vm732_vm2, %v803_v23, 0.0 }
 0x535   :  { %v808_v25 = vrot.slane %v807_v24, 4 }
 0x537   :  { %v809_v26 = vadd.f32 %v808_v25, %v807_v24 }
 0x539   :  { %v810_v27 = vrot.slane %v809_v26, 2 }
 0x53b   :  { %v811_v28 = vadd.f32 %v810_v27, %v809_v26 }
 0x53d   :  { %v812_v0 = vrot.slane %v811_v28, 1 }
 0x53f   :  { %v813_v1 = vadd.f32 %v812_v0, %v811_v28 }
 0x541   :  { %v814_v2 = vmul.f32 %v813_v1, %v1610_v5  ;;  %v1123_v1 = vld [vmem:[%s1711_s4 + $0x8] ss:$0 sm:$0xff] }
 0x543   :  { %v815_v3 = vsub.f32 %v803_v23, %v814_v2 }
 0x545   :  { %v816_v4 = vmul.f32 %v815_v3, %v815_v3 }
 0x547   :  { %v817_v29 = vsel %vm732_vm2, %v816_v4, 0.0 }
 0x548   :  { %v818_v30 = vrot.slane %v817_v29, 4 }
 0x54a   :  { %v819_v8 = vadd.f32 %v818_v30, %v817_v29 }
 0x54c   :  { %v820_v32 = vrot.slane %v819_v8, 2 }
 0x54e   :  { %v821_v34 = vadd.f32 %v820_v32, %v819_v8  ;;  %v1111_v8 = vld [vmem:[%s1713_s3 + $0x90] sm:$0xff]  ;;  %v1109_v32 = vld [vmem:[%s1713_s3 + $0x80] sm:$0xff] }
 0x54f   :  { %963 = vmatpush.msra.mxu1 %v1111_v8 }
 0x550   :  { %v822_v58 = vrot.slane %v821_v34, 1 }
 0x551   :  { %964 = vmatpush.msra.mxu1 %v1110_v31 }
 0x552   :  { %v823_v60 = vadd.f32 %v822_v58, %v821_v34 }
 0x553   :  { %965 = vmatpush.msra.mxu1 %v1109_v32 }
 0x554   :  { %v824_v56 = vmul.f32 %v823_v60, %v1610_v5 }
 0x556   :  { %v825_v57 = vadd.f32 1e-05, %v824_v56 }
 0x558   :  { %1131 = vrsqrt.f32 %v825_v57  ;;  %vm832_vm8 = vweird.f32 %v825_v57 }
 0x55e   :  { %v1132_v62 = vpop.eup %1131 }
 0x55f   :  { %v827_v54 = vmul.f32 %v1132_v62, %v825_v57  ;;  %vm833_vm7 = vweird.f32 %v1132_v62 }
 0x560   :  { %vm834_vm9 = vmor %vm832_vm8, %vm833_vm7 }
 0x561   :  { %v828_v55 = vmul.f32 %v1132_v62, %v827_v54 }
 0x563   :  { %v829_v61 = vmul.f32 0.5, %v828_v55 }
 0x565   :  { %v830_v52 = vsub.f32 1.5, %v829_v61 }
 0x567   :  { %v831_v63 = vmul.f32 %v1132_v62, %v830_v52 }
 0x569   :  { %v835_v50 = vsel %vm834_vm9, %v1132_v62, %v831_v63 }
 0x56a   :  { %v836_v51 = vmul.f32 %v835_v50, %v815_v3 }
 0x56c   :  { %v838_v48 = vmul.f32 %v1120_v53, %v836_v51 }
 0x56e   :  { %v840_v49 = vadd.f32 %v1121_v6, %v838_v48 }
 0x570   :  { %v841_v7 = vmax.f32 %v840_v49, 0.0 }
 0x572   :  { %1103 = vmatmul.msk.f32.vlgmr.msrb.gmra.mxu1 %vm706_vm1, %v841_v7 }
 0x5ef   :  { %v869_v35 = vpop.f32.mrf.mxu1 }
 0x5f0   :  { %v870_v46 = vadd.f32 %v1122_v9, %v869_v35 }
 0x5f2   :  { %v874_v47 = vsel %vm732_vm2, %v870_v46, 0.0 }
 0x5f3   :  { %v875_v10 = vrot.slane %v874_v47, 4 }
 0x5f5   :  { %v876_v11 = vadd.f32 %v875_v10, %v874_v47 }
 0x5f7   :  { %v877_v44 = vrot.slane %v876_v11, 2 }
 0x5f9   :  { %v878_v45 = vadd.f32 %v877_v44, %v876_v11 }
 0x5fb   :  { %v879_v12 = vrot.slane %v878_v45, 1 }
 0x5fd   :  { %v880_v13 = vadd.f32 %v879_v12, %v878_v45 }
 0x5ff   :  { %v881_v42 = vmul.f32 %v880_v13, %v1610_v5 }
 0x601   :  { %v882_v43 = vsub.f32 %v870_v46, %v881_v42 }
 0x603   :  { %v883_v14 = vmul.f32 %v882_v43, %v882_v43 }
 0x605   :  { %v884_v15 = vsel %vm732_vm2, %v883_v14, 0.0 }
 0x606   :  { %v885_v40 = vrot.slane %v884_v15, 4 }
 0x608   :  { %v886_v16 = vadd.f32 %v885_v40, %v884_v15 }
 0x60a   :  { %v887_v41 = vrot.slane %v886_v16, 2 }
 0x60c   :  { %v888_v19 = vadd.f32 %v887_v41, %v886_v16 }
 0x60e   :  { %v889_v39 = vrot.slane %v888_v19, 1 }
 0x610   :  { %v890_v20 = vadd.f32 %v889_v39, %v888_v19 }
 0x612   :  { %v891_v22 = vmul.f32 %v890_v20, %v1610_v5  ;;  %v1124_v5 = vld [vmem:[%s1711_s4 + $0x9] ss:$0 sm:$0xff] }
 0x614   :  { %v892_v23 = vadd.f32 1e-05, %v891_v22 }
 0x616   :  { %1133 = vrsqrt.f32 %v892_v23  ;;  %vm899_vm11 = vweird.f32 %v892_v23 }
 0x61c   :  { %v1134_v24 = vpop.eup %1133 }
 0x61d   :  { %v894_v25 = vmul.f32 %v1134_v24, %v892_v23  ;;  %vm900_vm10 = vweird.f32 %v1134_v24 }
 0x61e   :  { %vm901_vm12 = vmor %vm899_vm11, %vm900_vm10 }
 0x61f   :  { %v895_v26 = vmul.f32 %v1134_v24, %v894_v25 }
 0x621   :  { %v896_v27 = vmul.f32 0.5, %v895_v26 }
 0x623   :  { %v897_v28 = vsub.f32 1.5, %v896_v27 }
 0x625   :  { %v898_v0 = vmul.f32 %v1134_v24, %v897_v28 }
 0x627   :  { %v902_v2 = vsel %vm901_vm12, %v1134_v24, %v898_v0 }
 0x628   :  { %v903_v3 = vmul.f32 %v902_v2, %v882_v43 }
 0x62a   :  { %v905_v4 = vmul.f32 %v1123_v1, %v903_v3 }
 0x62c   :  { %v907_v29 = vadd.f32 %v1124_v5, %v905_v4 }
 0x62e   :  { %v908_v30 = vmax.f32 %v907_v29, 0.0 }
 0x630   :  { %1108 = vmatmul.msk.f32.vlgmr.msrb.gmra.mxu0 %vm706_vm1, %v908_v30 }
 0x6ad   :  { %v936_v34 = vpop.f32.mrf.mxu0 }
 0x6ae   :  { %v937_v36 = vadd.f32 %v1125_v33, %v936_v34 }
 0x6b0   :  { %v939_v58 = vmax.f32 %v937_v36, 0.0 }
 0x6b2   :  { %1113 = vmatmul.msk.f32.vlgmr.msra.gmra.mxu1 %vm706_vm1, %v939_v58 }
 0x72f   :  { %v967_v60 = vpop.f32.mrf.mxu1 }
 0x730   :  { %v968_v56 = vadd.f32 %v1126_v59, %v967_v60 }
 0x732   :  { %v971_v57 = vsel %vm970_vm13, %v968_v56, 0.0 }
 0x733   :  { %v972_v62 = vsel %vm706_vm1, %v971_v57, 0.0 }
 0x734   :  { %973 = vst [vmem:[%s1714_s5] sm:$0xff] %v972_v62 }

</bundles_post_ra>
